<compile_context>
chip_gen: v7x
topology: tpu7x:2x2x1
jax: 0.10.0
libtpu: 0.0.40
codegen_flags: <defaults>
</compile_context>

<pallas_src>
import functools
import math

import numpy as np
import jax
import jax.numpy as jnp
from jax import lax
from jax.experimental import pallas as pl
from jax.experimental.pallas import tpu as pltpu


# ---------------------------------------------------------------------------
# Interpolation weights (trace-time numpy constants)
# ---------------------------------------------------------------------------
def _make_interp_matrix(out_size: int, in_size: int, scale: float) -> np.ndarray:
    """Row-stochastic bilinear interpolation matrix (align_corners=False).

    Matches PyTorch's half-pixel mapping when an explicit scale_factor is given
    (src = (j + 0.5) / scale - 0.5, clamped at the borders).
    """
    j = np.arange(out_size, dtype=np.float32)
    src = (j + 0.5) / np.float32(scale) - np.float32(0.5)
    src = np.maximum(src, 0.0)
    i0 = np.minimum(np.floor(src).astype(np.int64), in_size - 1)
    i1 = np.minimum(i0 + 1, in_size - 1)
    w1 = (src - i0).astype(np.float32)
    w0 = (np.float32(1.0) - w1).astype(np.float32)
    w = np.zeros((out_size, in_size), dtype=np.float32)
    rows = np.arange(out_size)
    np.add.at(w, (rows, i0), w0)   # handles i0 == i1 (edge clamp) correctly
    np.add.at(w, (rows, i1), w1)
    return w


# ---------------------------------------------------------------------------
# Tiling plan
# ---------------------------------------------------------------------------
_LANE = 128
_SUBLANE = 8
_TARGET_IO_BYTES = 4 * 1024 * 1024     # ~1-4 MiB of double-buffered I/O per grid step
_MIN_IO_BYTES = 512 * 1024             # don't shrink blocks below this just for step count
_MIN_GRID_STEPS = 8                    # pipelining + >=4 steps per TC on v7x
_CHUNK_LIVE_BYTES = 192 * 1024         # vreg file is 64 x 4 KiB = 256 KiB; keep headroom
_VMEM_SLACK_BYTES = 4 * 1024 * 1024    # chunk intermediates + compiler internal scratch


def _cdiv(a: int, b: int) -> int:
    return -(-a // b)


def _plane_vmem(rows: int, cols: int, itemsize: int) -> int:
    """VMEM footprint of one (rows, cols) plane, padded to the (8,128) tile grid."""
    return _cdiv(rows, _SUBLANE) * _SUBLANE * _cdiv(cols, _LANE) * _LANE * itemsize


def _vmem_capacity_bytes() -> int:
    try:
        return int(pltpu.get_tpu_info().vmem_capacity_bytes)
    except Exception:
        return 64 * 1024 * 1024  # conservative default (v7x per-TensorCore VMEM)


def _plan_tiling(nc, h_in, w_in, h_out, w_out, in_isz, out_isz, c_isz, vmem_limit):
    """Returns (block_b, chunk_b): planes per grid step, planes per compute chunk."""
    in_pb = _plane_vmem(h_in, w_in, in_isz)
    out_pb = _plane_vmem(h_out, w_out, out_isz)
    io_pb = 2 * (in_pb + out_pb)            # double-buffered input + output, per plane

    # Live bytes per plane inside one compute chunk (bounds vreg pressure / spills).
    live_pb = (in_pb
               + _plane_vmem(h_out, h_in, c_isz)    # broadcast height weights
               + _plane_vmem(h_out, w_in, 4)        # f32 intermediate (height pass out)
               + _plane_vmem(h_out, w_in, c_isz)    # cast intermediate
               + _plane_vmem(h_out, w_out, 4))      # f32 result before final cast
    chunk_b = int(max(1, min(nc, _CHUNK_LIVE_BYTES // max(live_pb, 1))))

    # Grid block: as large as the I/O target and the VMEM budget allow.
    weights_vmem = 2 * (_plane_vmem(w_in, w_out, c_isz) + _plane_vmem(h_out, h_in, c_isz))
    budget = max(io_pb, vmem_limit - weights_vmem - _VMEM_SLACK_BYTES)
    block_b = int(max(1, min(nc, _TARGET_IO_BYTES // io_pb, budget // io_pb)))

    # Keep >= _MIN_GRID_STEPS steps when that still leaves reasonably sized blocks.
    if _cdiv(nc, block_b) < _MIN_GRID_STEPS:
        cand = _cdiv(nc, _MIN_GRID_STEPS)
        if cand >= 1 and cand * io_pb >= _MIN_IO_BYTES:
            block_b = cand

    # Prefer an even number of grid steps (v7x shards the parallel axis over 2 TCs).
    steps = _cdiv(nc, block_b)
    if steps > 1 and steps % 2 == 1:
        cand = _cdiv(nc, steps + 1)
        if cand >= 1 and _cdiv(nc, cand) % 2 == 0:
            block_b = cand

    chunk_b = min(chunk_b, block_b)
    return block_b, chunk_b


# ---------------------------------------------------------------------------
# Kernel
# ---------------------------------------------------------------------------
def _make_kernel(h_in, w_in, h_out, w_out, block_b, chunk_b, compute_dtype, merged):
    n_full = block_b // chunk_b
    rem = block_b % chunk_b

    def kernel(x_ref, wwt_ref, wh_ref, o_ref):
        # x_ref : (block_b, H_in,  W_in)
        # wwt_ref: (W_in, W_out)   width weights, pre-transposed
        # wh_ref : (H_out, H_in)   height weights
        # o_ref : (block_b, H_out, W_out)
        wwt = wwt_ref[...]
        wh = wh_ref[...]

        def process(start, cb, wh_b, ww_arg):
            x_c = x_ref[pl.ds(start, cb)].astype(compute_dtype)         # (cb, H_in, W_in)
            # Height pass first (smaller side): batched per-plane matmul,
            # f32 accumulation on the MXU.
            y = lax.dot_general(
                wh_b, x_c,
                dimension_numbers=(((2,), (1,)), ((0,), (0,))),
                preferred_element_type=jnp.float32)                     # (cb, H_out, W_in) f32
            if merged:
                # Width pass as ONE big-M MXU matmul (M = cb*H_out); the reshape is a
                # free sublane relayout because H_out % 8 == 0.
                y2 = y.reshape(cb * h_out, w_in).astype(compute_dtype)
                o2 = jnp.dot(y2, ww_arg, preferred_element_type=jnp.float32)
                out = o2.reshape(cb, h_out, w_out)
            else:
                # H_out not sublane-aligned: keep 3-D and batch to avoid a relayout copy.
                out = lax.dot_general(
                    y.astype(compute_dtype), ww_arg,
                    dimension_numbers=(((2,), (1,)), ((0,), (0,))),
                    preferred_element_type=jnp.float32)                 # (cb, H_out, W_out)
            o_ref[pl.ds(start, cb)] = out.astype(o_ref.dtype)

        if n_full > 0:
            # Hoist broadcast weight operands out of the chunk loop.
            wh_b = jnp.broadcast_to(wh[None], (chunk_b, h_out, h_in))
            ww_arg = wwt if merged else jnp.broadcast_to(wwt[None], (chunk_b, w_in, w_out))

            @pl.loop(0, n_full)
            def _(ci):
                process(ci * chunk_b, chunk_b, wh_b, ww_arg)

        if rem > 0:
            wh_b_r = jnp.broadcast_to(wh[None], (rem, h_out, h_in))
            ww_r = wwt if merged else jnp.broadcast_to(wwt[None], (rem, w_in, w_out))
            process(n_full * chunk_b, rem, wh_b_r, ww_r)

    return kernel


# ---------------------------------------------------------------------------
# Wrapper (equivalent of MiDaS `Interpolate.forward`)
# ---------------------------------------------------------------------------
@functools.partial(jax.jit, static_argnames=("scale_factor", "mode"))
def interpolate(x, scale_factor: float = 2.0, mode: str = "bilinear"):
    """Pallas equivalent of nn.functional.interpolate(..., align_corners=False)."""
    if mode != "bilinear":
        # TODO(synk): only the bilinear mode (the one MiDaS uses) is implemented.
        raise NotImplementedError(f"mode={mode!r} not implemented")

    n, c, h_in, w_in = x.shape
    sf = float(scale_factor)
    h_out = int(math.floor(h_in * sf))
    w_out = int(math.floor(w_in * sf))
    nc = n * c

    # Trace-time (numpy) weight matrices — constants folded into the jit.
    wh_np = _make_interp_matrix(h_out, h_in, sf)                            # (H_out, H_in)
    wwt_np = np.ascontiguousarray(_make_interp_matrix(w_out, w_in, sf).T)   # (W_in, W_out)

    # bf16 inputs run weights + intermediate on the bf16 MXU path (f32 accumulate);
    # f32 inputs stay f32 end-to-end.
    compute_dtype = jnp.bfloat16 if x.dtype == jnp.bfloat16 else jnp.float32
    wh = jnp.asarray(wh_np, dtype=compute_dtype)
    wwt = jnp.asarray(wwt_np, dtype=compute_dtype)

    # Generation-aware VMEM limit (v7x: 64 MiB/TC, v5e/v6e: 128 MiB physical).
    vmem_cap = _vmem_capacity_bytes()
    vmem_limit = int(vmem_cap * 3 // 4)
    in_isz = jnp.dtype(x.dtype).itemsize
    c_isz = jnp.dtype(compute_dtype).itemsize
    block_b, chunk_b = _plan_tiling(nc, h_in, w_in, h_out, w_out,
                                    in_isz, in_isz, c_isz, vmem_limit)
    grid = _cdiv(nc, block_b)
    merged = (h_out % _SUBLANE == 0)

    kernel = _make_kernel(h_in, w_in, h_out, w_out, block_b, chunk_b,
                          compute_dtype, merged)

    x_flat = x.reshape(nc, h_in, w_in)

    out_flat = pl.pallas_call(
        kernel,
        out_shape=jax.ShapeDtypeStruct((nc, h_out, w_out), x.dtype),
        grid_spec=pltpu.PrefetchScalarGridSpec(
            num_scalar_prefetch=0,
            grid=(grid,),
            in_specs=[
                pl.BlockSpec((block_b, h_in, w_in), lambda i: (i, 0, 0)),
                pl.BlockSpec((w_in, w_out), lambda i: (0, 0)),
                pl.BlockSpec((h_out, h_in), lambda i: (0, 0)),
            ],
            out_specs=pl.BlockSpec((block_b, h_out, w_out), lambda i: (i, 0, 0)),
        ),
        compiler_params=pltpu.CompilerParams(
            dimension_semantics=("parallel",),
            vmem_limit_bytes=vmem_limit,
        ),
    )(x_flat, wwt, wh)

    return out_flat.reshape(n, c, h_out, w_out)


if __name__ == "__main__":
    key = jax.random.PRNGKey(0)
    # MiDaS uses Interpolate(scale_factor=2, mode="bilinear"); no learned params.
    x = jax.random.normal(key, (2, 4, 16, 16), dtype=jnp.float32)

    y = interpolate(x, scale_factor=2.0, mode="bilinear")
    jax.block_until_ready(y)

    assert y.shape == (2, 4, 32, 32), y.shape
    assert y.dtype == x.dtype

    # Sanity check: for scale_factor=2 the PyTorch align_corners=False mapping
    # coincides with jax.image.resize's half-pixel bilinear.
    ref = jax.image.resize(x, (2, 4, 32, 32), method="bilinear")
    max_err = float(jnp.max(jnp.abs(y - ref)))
    assert max_err < 5e-2, max_err

    print("KERNEL_OK")
</pallas_src>

<mosaic_0001>
module attributes {stable_mosaic.version = 11 : i64} {
  func.func @kernel(%arg0: i32, %arg1: memref<8x16x16xf32, #tpu.memory_space<vmem>>, %arg2: memref<16x32xf32, #tpu.memory_space<vmem>>, %arg3: memref<32x16xf32, #tpu.memory_space<vmem>>, %arg4: memref<8x32x32xf32, #tpu.memory_space<vmem>>) attributes {dimension_semantics = [#tpu.dimension_semantics<parallel>], iteration_bounds = array<i64: 1>, scalar_prefetch = 0 : i64, scratch_operands = 0 : i64, tpu.core_type = #tpu.core_type<tc>, window_params = [{transform_indices = @transform_0, window_bounds = array<i64: 8, 16, 16>}, {pipeline_mode = #tpu.pipeline_mode<synchronous>, transform_indices = @transform_1, window_bounds = array<i64: 16, 32>}, {pipeline_mode = #tpu.pipeline_mode<synchronous>, transform_indices = @transform_2, window_bounds = array<i64: 32, 16>}, {transform_indices = @transform_3, window_bounds = array<i64: 8, 32, 32>}]} {
    %c0 = arith.constant 0 : index
    %c0_0 = arith.constant 0 : index
    %0 = vector.load %arg2[%c0, %c0_0] : memref<16x32xf32, #tpu.memory_space<vmem>>, vector<16x32xf32>
    %c0_1 = arith.constant 0 : index
    %c0_2 = arith.constant 0 : index
    %1 = vector.load %arg3[%c0_1, %c0_2] : memref<32x16xf32, #tpu.memory_space<vmem>>, vector<32x16xf32>
    %2 = vector.shape_cast %1 : vector<32x16xf32> to vector<1x32x16xf32>
    %3 = vector.shape_cast %2 : vector<1x32x16xf32> to vector<1x32x16xf32>
    %4 = vector.broadcast %3 : vector<1x32x16xf32> to vector<2x32x16xf32>
    %c0_i32 = arith.constant 0 : i32
    %c4_i32 = arith.constant 4 : i32
    %5 = arith.addi %c0_i32, %c4_i32 : i32
    %c1_i32 = arith.constant 1 : i32
    scf.for %arg5 = %c0_i32 to %5 step %c1_i32  : i32 {
      %c1_i32_4 = arith.constant 1 : i32
      %6 = arith.muli %arg5, %c1_i32_4 : i32
      %c0_i32_5 = arith.constant 0 : i32
      %7 = arith.addi %c0_i32_5, %6 : i32
      %c2_i32 = arith.constant 2 : i32
      %8 = arith.muli %7, %c2_i32 : i32
      %9 = arith.index_cast %8 : i32 to index
      %c0_6 = arith.constant 0 : index
      %c0_7 = arith.constant 0 : index
      %10 = vector.load %arg1[%9, %c0_6, %c0_7] : memref<8x16x16xf32, #tpu.memory_space<vmem>>, vector<2x16x16xf32>
      %cst = arith.constant dense<0.000000e+00> : vector<2x32x16xf32>
      %11 = tpu.matmul %4, %10, %cst {dimension_numbers = #tpu.dot_dimension_numbers<[2], [1], [1], [2], [0, 0, 0, 1, 1, 2], [0], [0]>} : vector<2x32x16xf32>, vector<2x16x16xf32>, vector<2x32x16xf32> -> vector<2x32x16xf32>
      %12 = vector.shape_cast %11 : vector<2x32x16xf32> to vector<64x16xf32>
      %cst_8 = arith.constant dense<0.000000e+00> : vector<64x32xf32>
      %13 = tpu.matmul %12, %0, %cst_8 {dimension_numbers = #tpu.dot_dimension_numbers<[1], [0], [0], [1], [0, 0, 1, 1], [], []>} : vector<64x16xf32>, vector<16x32xf32>, vector<64x32xf32> -> vector<64x32xf32>
      %14 = vector.shape_cast %13 : vector<64x32xf32> to vector<2x32x32xf32>
      %15 = arith.index_cast %8 : i32 to index
      %c0_9 = arith.constant 0 : index
      %c0_10 = arith.constant 0 : index
      %16 = vector.load %arg4[%15, %c0_9, %c0_10] : memref<8x32x32xf32, #tpu.memory_space<vmem>>, vector<2x32x32xf32>
      tpu.vector_store %arg4[%15, %c0_9, %c0_10], %14 {strides = array<i32>} : memref<8x32x32xf32, #tpu.memory_space<vmem>>, vector<2x32x32xf32>,
    }
    %c4_i32_3 = arith.constant 4 : i32
    return
  }
  func.func @transform_0(%arg0: i32) -> (i32, i32, i32) {
    %c0_i32 = arith.constant 0 : i32
    %c0_i32_0 = arith.constant 0 : i32
    %c0_i32_1 = arith.constant 0 : i32
    return %arg0, %c0_i32, %c0_i32_0 : i32, i32, i32
  }
  func.func @transform_1(%arg0: i32) -> (i32, i32) {
    %c0_i32 = arith.constant 0 : i32
    %c0_i32_0 = arith.constant 0 : i32
    %c0_i32_1 = arith.constant 0 : i32
    return %c0_i32, %c0_i32_0 : i32, i32
  }
  func.func @transform_2(%arg0: i32) -> (i32, i32) {
    %c0_i32 = arith.constant 0 : i32
    %c0_i32_0 = arith.constant 0 : i32
    %c0_i32_1 = arith.constant 0 : i32
    return %c0_i32, %c0_i32_0 : i32, i32
  }
  func.func @transform_3(%arg0: i32) -> (i32, i32, i32) {
    %c0_i32 = arith.constant 0 : i32
    %c0_i32_0 = arith.constant 0 : i32
    %c0_i32_1 = arith.constant 0 : i32
    return %arg0, %c0_i32, %c0_i32_0 : i32, i32, i32
  }
}

</mosaic_0001>

<bundles_post_ra>
// kernel: interpolate.1
= control target key start
LH: loop header
LB: loop body
LE: loop exit
PB: predicated region body
PF: predicated region fallthrough
CT: control target
= control target key end

     0   :  { %8 = vsyncpa [#allocation3], 0  ;;  %s781_s0 = inlined_call_operand.hbm [shape: f32[8,16,16], index: 0, kind: input, shape index: {}]   ;;  %s782_s1 = inlined_call_operand.hbm [shape: f32[16,32], index: 1, kind: input, shape index: {}]   ;;  %s783_s2 = inlined_call_operand.hbm [shape: f32[32,16], index: 2, kind: input, shape index: {}]   ;;  %s784_s3 = inlined_call_operand.hbm [shape: f32[8,32,32], index: 3, kind: output, shape index: {}]  }
   0x1   :  { %9 = vsyncpa [#allocation6], 0 }
   0x2   :  { %10 = vsyncpa [#allocation4], 0  ;;  %s632_s12 = smov [#allocation5]   ;;  %s633_s14 = smov [#allocation2]  }
   0x3   :  { %s28_s13 = sshll.u32 %s632_s12, 4  ;;  %s16_s15 = sshll.u32 %s633_s14, 4  ;;  %s29_s13 = int_to_ptr.vmem [resolvable:$true] %s28_s13  ;;  %s658_s15 = int_to_ptr.vmem [resolvable:$true] %s16_s15 }
   0x4   :  { %s530_s18 = scalar_lea.hbm %s782_s1, 256 }
   0x5   :  { %p531_p0 = scmp.ne.s32.totalorder %s782_s1, %s530_s18  ;;  %p534_p1 = scmp.lt.u32.totalorder %s530_s18, %s782_s1 }
   0x7   :  { %p536_p2 = pnand %p534_p1, %p531_p0 }
   0x9   :  { %539 = shalt.err (!%p536_p2)
}
   0xa   :  { %s540_s23 = scalar_lea.vmem %s29_s13, 256  ;;  %p545_p4 = scmp.lt.s32.totalorder %s29_s13, %s29_s13 }
   0xb   :  { %p541_p3 = scmp.ne.s32.totalorder %s29_s13, %s540_s23  ;;  %p546_p5 = scmp.lt.s32.totalorder %s540_s23, %s540_s23 }
   0xd   :  { %p547_p6 = por %p546_p5, %p545_p4 }
   0xf   :  { %p548_p7 = pnand %p547_p6, %p541_p3 }
  0x11   :  { %551 = shalt.err (!%p548_p7)
}
  0x12   :  { %s634_s24 = smov 128   ;;  %s635_s25 = smov 8  }
  0x13   :  { %34 = dma.hbm_to_vmem [thread:$0]  %s782_s1, 256, %s29_s13, [#allocation6], %s634_s24, %s634_s24, %s635_s25  }
  0x14   :  { %s552_s30 = scalar_lea.hbm %s781_s0, 2048 }
  0x15   :  { %p553_p8 = scmp.ne.s32.totalorder %s781_s0, %s552_s30  ;;  %p556_p9 = scmp.lt.u32.totalorder %s552_s30, %s781_s0 }
  0x17   :  { %p558_p10 = pnand %p556_p9, %p553_p8 }
  0x19   :  { %561 = shalt.err (!%p558_p10)
}
  0x1a   :  { %s562_s8 = scalar_lea.vmem %s658_s15, 2048  ;;  %p567_p12 = scmp.lt.s32.totalorder %s658_s15, %s658_s15 }
  0x1b   :  { %p563_p11 = scmp.ne.s32.totalorder %s658_s15, %s562_s8  ;;  %p568_p13 = scmp.lt.s32.totalorder %s562_s8, %s562_s8 }
  0x1d   :  { %p569_p0 = por %p568_p13, %p567_p12 }
  0x1f   :  { %p570_p1 = pnand %p569_p0, %p563_p11 }
  0x21   :  { %573 = shalt.err (!%p570_p1)
}
  0x22   :  { %22 = dma.hbm_to_vmem [thread:$0]  %s781_s0, 2048, %s658_s15, [#allocation3], %s634_s24, %s634_s24, %s635_s25  }
  0x23   :  { %s636_s10 = smov [#allocation7]   ;;  %s574_s14 = scalar_lea.hbm %s783_s2, 512 }
  0x24   :  { %s40_s11 = sshll.u32 %s636_s10, 4  ;;  %p575_p2 = scmp.ne.s32.totalorder %s783_s2, %s574_s14  ;;  %s41_s11 = int_to_ptr.vmem [resolvable:$true] %s40_s11 }
  0x25   :  { %p578_p3 = scmp.lt.u32.totalorder %s574_s14, %s783_s2 }
  0x27   :  { %p580_p4 = pnand %p578_p3, %p575_p2 }
  0x29   :  { %583 = shalt.err (!%p580_p4)
}
  0x2a   :  { %s584_s20 = scalar_lea.vmem %s41_s11, 512  ;;  %p589_p6 = scmp.lt.s32.totalorder %s41_s11, %s41_s11 }
  0x2b   :  { %p585_p5 = scmp.ne.s32.totalorder %s41_s11, %s584_s20  ;;  %p590_p7 = scmp.lt.s32.totalorder %s584_s20, %s584_s20 }
  0x2d   :  { %p591_p8 = por %p590_p7, %p589_p6 }
  0x2f   :  { %p592_p9 = pnand %p591_p8, %p585_p5 }
  0x31   :  { %595 = shalt.err (!%p592_p9)
}
  0x32   :  { %46 = dma.hbm_to_vmem [thread:$0]  %s783_s2, 512, %s41_s11, [#allocation6], %s634_s24, %s634_s24, %s635_s25  }
  0x33   :  { %622 = dma.done.wait [#allocation3], 2048  }
  0x34   :  { %623 = vsyncadd [#allocation3], 4294965248 }
  0x35   :  { %624 = dma.done.wait [#allocation6], 768  }
  0x36   :  { %625 = vsyncadd [#allocation6], 4294966528  ;;  %v710_v0 = vld [vmem:[#allocation5] sm:$0xff]  ;;  %v712_v1 = vld [vmem:[#allocation5 + $0x8] sm:$0xff]  ;;  %s722_s21 = smov 0  }
  0x37   :  { %v714_v2 = vld [vmem:[#allocation7] sm:$0xff]  ;;  %v716_v3 = vld [vmem:[#allocation7 + $0x8] sm:$0xff]  ;;  %v718_v4 = vld [vmem:[#allocation7 + $0x10] sm:$0xff] }
  0x38   :  { %v720_v5 = vld [vmem:[#allocation7 + $0x18] sm:$0xff] }
  0x39 LB: > { %vm75_vm0 = vcmask 130048   ;;  %v512_v6 = vpack.c.bf16 %v712_v1, %v710_v0  ;;  %s444_s2 = sshll.u32 %s630_s21, 5  ;;  %s445_s23 = sshll.u32 %s630_s21, 6  ;;  %vm389_vm1 = vcmask 261120   ;;  %s630_s21 = sphi %s722_s21, %s67_s21  }
  0x3a   : > { %472 = vmatprep.mubr.msk.f32.mxu1 %vm75_vm0, %v714_v2  ;;  %s70_s22 = scalar_lea.vmem [#allocation2], %s444_s2  ;;  %s388_s26 = scalar_lea.vmem [#allocation8], %s445_s23 }
  0x3b   : > { %513 = vmatprep.subr.bf16.mxu0 %v512_v6  ;;  %v71_v7 = vld [vmem:[%s70_s22] sm:$0xff]  ;;  %v72_v8 = vld [vmem:[%s70_s22 + $0x8] sm:$0xff]  ;;  %v73_v9 = vld [vmem:[%s70_s22 + $0x10] sm:$0xff]  ;;  %s67_s21 = sadd.s32 1, %s630_s21  }
  0x3c   : > { %515 = vmatpush3.bf16.msra.mxu0 %v512_v6  ;;  %v504_v10 = vpack.c.bf16 %v72_v8, %v71_v7  ;;  %v74_v11 = vld [vmem:[%s70_s22 + $0x18] sm:$0xff]  ;;  %p64_p10 = scmp.ge.s32.totalorder %s67_s21, 4  }
  0x3d   : > { %v508_v12 = vpack.c.bf16 %v74_v11, %v73_v9  ;;  %s637_s27 = smov (%p64_p10), [#allocation8]  }
  0x3e   : > { %505 = vmatprep.subr.bf16.mxu1 %v504_v10  ;;  %s403_s28 = sshll.u32 (%p64_p10), %s637_s27, 4  ;;  %s404_s28 = int_to_ptr.vmem [resolvable:$true] %s403_s28 }
  0x3f   : > { %507 = vmatpush3.bf16.msra.mxu1 %v504_v10  ;;  %s596_s29 = scalar_lea.vmem (%p64_p10), %s404_s28, 4096  ;;  %p601_p12 = scmp.lt.s32.totalorder (%p64_p10), %s404_s28, %s404_s28 }
  0x40   : > { %509 = vmatprep.subr.bf16.mxu1 %v508_v12  ;;  %p597_p11 = scmp.ne.s32.totalorder (%p64_p10), %s404_s28, %s596_s29  ;;  %p602_p13 = scmp.lt.s32.totalorder (%p64_p10), %s596_s29, %s596_s29 }
  0x42   : > { %473 = vmatmul.mubr.msk.f32.vlgmr.msra.gmra.mrb[0].mxu1 %vm75_vm0, %v716_v3  ;;  %p603_p0 = por (%p64_p10), %p602_p13, %p601_p12 }
  0x43   : > { %511 = vmatpush3.bf16.msra.mxu1 %v508_v12  ;;  %475 = vmatprep.mubr.msk.f32.mxu1 %vm75_vm0, %v718_v4 }
  0x44   :  { %p604_p1 = pnand (%p64_p10), %p603_p0, %p597_p11 }
  0x46   : > { %476 = vmatmul.mubr.msk.f32.gmra.mrb[2].mxu1 %vm75_vm0, %v720_v5 }
  0x47   : > { %482 = vmatprep.mubr.msk.f32.mxu1 %vm75_vm0, %v714_v2 }
  0x4a   : > { %483 = vmatmul.mubr.msk.f32.vlgmr.msra.gmra.mrb[4].mxu1 %vm75_vm0, %v716_v3 }
  0x4b   : > { %485 = vmatprep.mubr.msk.f32.mxu1 %vm75_vm0, %v718_v4 }
  0x4e   : > { %486 = vmatmul.mubr.msk.f32.gmra.mrb[6].mxu1 %vm75_vm0, %v720_v5 }
 0x115   : > { %v474_v13 = vpop.f32.mrb[0].mxu1 }
 0x116   : > { %v154_v14 = vpop.f32.mrb[1].mxu1 }
 0x117   : > { %492 = vmatprep.mubr.msk.f32.mxu0 %vm75_vm0, %v154_v14 }
 0x118   : > { %493 = vmatmul.mubr.msk.f32.vlgmr.msra.gmra.mrb[0].mxu0 %vm75_vm0, %v474_v13 }
 0x119   : > { %v477_v15 = vpop.f32.mrb[2].mxu1 }
 0x11a   : > { %v164_v16 = vpop.f32.mrb[3].mxu1 }
 0x11b   : > { %495 = vmatprep.mubr.msk.f32.mxu0 %vm75_vm0, %v164_v16 }
 0x11c   : > { %496 = vmatmul.mubr.msk.f32.gmra.mrb[2].mxu0 %vm75_vm0, %v477_v15 }
 0x11d   : > { %v484_v17 = vpop.f32.mrb[4].mxu1 }
 0x11e   : > { %v239_v18 = vpop.f32.mrb[5].mxu1 }
 0x11f   : > { %498 = vmatprep.mubr.msk.f32.mxu0 %vm75_vm0, %v239_v18 }
 0x120   : > { %499 = vmatmul.mubr.msk.f32.gmra.mrb[4].mxu0 %vm75_vm0, %v484_v17 }
 0x121   : > { %v487_v19 = vpop.f32.mrb[6].mxu1 }
 0x122   : > { %v249_v20 = vpop.f32.mrb[7].mxu1 }
 0x123   : > { %501 = vmatprep.mubr.msk.f32.mxu0 %vm75_vm0, %v249_v20 }
 0x124   : > { %502 = vmatmul.mubr.msk.f32.gmra.mrb[6].mxu0 %vm75_vm0, %v487_v19 }
 0x1eb   : > { %v494_v21 = vpop.f32.mrb[0].mxu0 }
 0x1ec   : > { %391 = vst.msk [vmem:[%s388_s26 + $0x8] sm:$0xff] %vm389_vm1, %v494_v21  ;;  %v348_v22 = vpop.f32.mrb[1].mxu0 }
 0x1ed   : > { %390 = vst.msk [vmem:[%s388_s26] sm:$0xff] %vm389_vm1, %v348_v22 }
 0x1ef   : > { %v497_v23 = vpop.f32.mrb[2].mxu0 }
 0x1f0   : > { %393 = vst.msk [vmem:[%s388_s26 + $0x18] sm:$0xff] %vm389_vm1, %v497_v23  ;;  %v358_v24 = vpop.f32.mrb[3].mxu0 }
 0x1f1   : > { %392 = vst.msk [vmem:[%s388_s26 + $0x10] sm:$0xff] %vm389_vm1, %v358_v24 }
 0x1f3   : > { %v500_v25 = vpop.f32.mrb[4].mxu0  ;;  %66 = sbr.rel (!%p64_p10) target bundleno = 57 (0x39), region = 53 }
 0x1f4   : > { %395 = vst.msk [vmem:[%s388_s26 + $0x28] sm:$0xff] %vm389_vm1, %v500_v25  ;;  %v368_v26 = vpop.f32.mrb[5].mxu0 }
 0x1f5   : > { %394 = vst.msk [vmem:[%s388_s26 + $0x20] sm:$0xff] %vm389_vm1, %v368_v26 }
 0x1f7   : > { %v503_v27 = vpop.f32.mrb[6].mxu0 }
 0x1f8   : > { %397 = vst.msk [vmem:[%s388_s26 + $0x38] sm:$0xff] %vm389_vm1, %v503_v27  ;;  %v378_v28 = vpop.f32.mrb[7].mxu0 }
 0x1f9   : > { %396 = vst.msk [vmem:[%s388_s26 + $0x30] sm:$0xff] %vm389_vm1, %v378_v28 }
 0x1fa   :  { %607 = shalt.err (!%p604_p1)
}
 0x1fb   :  { %s608_s5 = scalar_lea.hbm %s784_s3, 4096 }
 0x1fc   :  { %p609_p2 = scmp.ne.s32.totalorder %s784_s3, %s608_s5  ;;  %p612_p3 = scmp.lt.u32.totalorder %s608_s5, %s784_s3 }
 0x1fe   :  { %p614_p4 = pnand %p612_p3, %p609_p2 }
 0x200   :  { %617 = shalt.err (!%p614_p4)
}
 0x201   :  { %409 = dma.vmem_to_hbm [thread:$0]  %s404_s28, 4096, %s784_s3, [#allocation4], %s634_s24, %s634_s24, %s635_s25  }
 0x202   :  { %626 = dma.done.wait [#allocation4], 4096  }
 0x203   :  { %627 = vsyncadd [#allocation4], 4294963200 }
 0x204   :  { %413 = vsyncpa [#allocation3], 1 }
 0x205   :  { %414 = vsyncpa [#allocation6], 1 }
 0x206   :  { %415 = vsyncpa [#allocation4], 1 }

</bundles_post_ra>
